<compile_context>
chip_gen: v7x
topology: tpu7x:2x2x1
jax: 0.10.0
libtpu: 0.0.40
codegen_flags: <defaults>
</compile_context>

<pallas_src>
import jax
import jax.numpy as jnp
from jax.experimental import pallas as pl
from jax.experimental.pallas import tpu as pltpu


def _refill_pad_kernel(x_ref, o_ref):
    """x_ref: (TR, L) tile; o_ref: (TR, L + TAIL) tile. Load once, store twice."""
    L = x_ref.shape[-1]
    tail = o_ref.shape[-1] - L
    xv = x_ref[...]                    # single vld of the tile; feeds both stores
    o_ref[:, :L] = xv                  # bulk copy
    o_ref[:, L:] = xv[:, L - tail:]    # re-emit the last `tail` samples


def _vmem_capacity_bytes(default=64 << 20):
    try:
        info = pltpu.get_tpu_info()
        cap = getattr(info, "vmem_capacity_bytes", None)
        if cap:
            return int(cap)
    except Exception:
        pass
    return default


def _xla_fallback(x2, L, tail):
    return jnp.concatenate([x2, x2[..., L - tail:]], axis=-1)


def refill_pad_1d(x: jax.Array, padding=(0, 4)) -> jax.Array:
    """Pallas implementation of RefillPad1d(padding).forward(x).

    x: (..., L) -> (..., L + tail) with tail = padding[1] (clamped like torch's
    `x[..., -P:]`, so P == 0 or P >= L re-appends the whole signal).
    """
    right = int(padding[1])
    if right < 0:
        raise ValueError("negative right padding is not supported")

    *lead, L = x.shape
    if L == 0:
        # cat of two empty slices along the last axis -> unchanged.
        return x

    # torch `x[..., -right:]` semantics (slice clamping; `-0` means full copy).
    tail = right if 0 < right < L else L
    out_len = L + tail

    R = 1
    for d in lead:
        R *= d
    x2 = x.reshape(R, L)

    itemsize = jnp.dtype(x.dtype).itemsize
    pack = max(8, 32 // itemsize)        # sublane pack: 8 f32 / 16 bf16 / 32 int8

    vmem_cap = _vmem_capacity_bytes()
    budget = vmem_cap // 4               # double-buffered (in + out) footprint target
    vmem_limit = vmem_cap // 2           # scoped VMEM limit requested from Mosaic

    bytes_per_row = (L + out_len) * itemsize
    max_rows = budget // (2 * bytes_per_row)   # 2x for double buffering

    # Lane-sparse, tiny, or pathologically long rows: let XLA do the copy.
    # TODO(synk): add an L-axis (lane) grid dimension for very long sequences so
    # the Pallas path also covers the max_rows < pack regime instead of falling back.
    if R < 8 or out_len < 128 or max_rows < pack:
        out2 = _xla_fallback(x2, L, tail)
        return out2.reshape(*lead, out_len)

    if R <= pack:
        tr = R                                    # full row extent: always legal
    else:
        tr = min(R, max_rows)
        tr = max(pack, (tr // pack) * pack)       # dtype-aware sublane rounding
        if R >= 2 * pack:
            # Keep >= 2 grid steps: pipelining + both v7x TensorCores.
            half = -(-((R + 1) // 2) // pack) * pack
            tr = min(tr, half)
        if tr >= R:
            tr = R
    grid_r = pl.cdiv(R, tr)

    out2 = pl.pallas_call(
        _refill_pad_kernel,
        out_shape=jax.ShapeDtypeStruct((R, out_len), x.dtype),
        grid_spec=pltpu.PrefetchScalarGridSpec(
            num_scalar_prefetch=0,
            grid=(grid_r,),
            in_specs=[pl.BlockSpec((tr, L), lambda r: (r, 0))],
            out_specs=pl.BlockSpec((tr, out_len), lambda r: (r, 0)),
        ),
        compiler_params=pltpu.CompilerParams(
            dimension_semantics=("parallel",),
            vmem_limit_bytes=int(vmem_limit),
        ),
        cost_estimate=pl.CostEstimate(
            flops=0,
            transcendentals=0,
            bytes_accessed=int(R * (L + out_len) * itemsize),
        ),
    )(x2)

    return out2.reshape(*lead, out_len)


def _reference(x, padding=(0, 4)):
    P = padding[1]
    return jnp.concatenate([x, x[..., -P:]], axis=-1)


if __name__ == "__main__":
    key = jax.random.PRNGKey(0)
    padding = (0, 4)

    # Small shape from the module spec (lane-sparse -> XLA fallback path).
    x_small = jax.random.normal(key, (2, 4, 16), dtype=jnp.float32)
    out_small = jax.block_until_ready(refill_pad_1d(x_small, padding))
    ref_small = _reference(x_small, padding)
    assert out_small.shape == ref_small.shape, out_small.shape
    assert jnp.allclose(out_small, ref_small), "small-shape mismatch vs reference"

    # Larger shape that exercises the Pallas kernel (out_len >= 128, R >= 8).
    k1, k2 = jax.random.split(key)
    x_big = jax.random.normal(k1, (2, 32, 256), dtype=jnp.float32)
    out_big = jax.block_until_ready(refill_pad_1d(x_big, padding))
    ref_big = _reference(x_big, padding)
    assert out_big.shape == ref_big.shape, out_big.shape
    assert jnp.allclose(out_big, ref_big), "f32 Pallas path mismatch vs reference"

    # bf16 exercises the 16-row sublane pack (pure copy -> exact equality).
    x_bf16 = jax.random.normal(k2, (2, 32, 256), dtype=jnp.bfloat16)
    out_bf16 = jax.block_until_ready(refill_pad_1d(x_bf16, padding))
    ref_bf16 = _reference(x_bf16, padding)
    assert out_bf16.shape == ref_bf16.shape, out_bf16.shape
    assert jnp.array_equal(out_bf16, ref_bf16), "bf16 Pallas path mismatch vs reference"

    print("KERNEL_OK")
</pallas_src>

<mosaic_0001>
module attributes {stable_mosaic.version = 11 : i64} {
  func.func @_refill_pad_kernel(%arg0: i32, %arg1: memref<32x256xf32, #tpu.memory_space<vmem>>, %arg2: memref<32x260xf32, #tpu.memory_space<vmem>>) attributes {dimension_semantics = [#tpu.dimension_semantics<parallel>], iteration_bounds = array<i64: 2>, scalar_prefetch = 0 : i64, scratch_operands = 0 : i64, tpu.core_type = #tpu.core_type<tc>, window_params = [{transform_indices = @transform_0, window_bounds = array<i64: 32, 256>}, {transform_indices = @transform_1, window_bounds = array<i64: 32, 260>}]} {
    %c0 = arith.constant 0 : index
    %c0_0 = arith.constant 0 : index
    %0 = vector.load %arg1[%c0, %c0_0] : memref<32x256xf32, #tpu.memory_space<vmem>>, vector<32x256xf32>
    %c0_1 = arith.constant 0 : index
    %c0_2 = arith.constant 0 : index
    %1 = vector.load %arg2[%c0_1, %c0_2] : memref<32x260xf32, #tpu.memory_space<vmem>>, vector<32x256xf32>
    tpu.vector_store %arg2[%c0_1, %c0_2], %0 {strides = array<i32>} : memref<32x260xf32, #tpu.memory_space<vmem>>, vector<32x256xf32>,
    %2 = vector.extract_strided_slice %0 {offsets = [0, 252], sizes = [32, 4], strides = [1, 1]} : vector<32x256xf32> to vector<32x4xf32>
    %c0_3 = arith.constant 0 : index
    %c256 = arith.constant 256 : index
    %3 = vector.load %arg2[%c0_3, %c256] : memref<32x260xf32, #tpu.memory_space<vmem>>, vector<32x4xf32>
    tpu.vector_store %arg2[%c0_3, %c256], %2 {strides = array<i32>} : memref<32x260xf32, #tpu.memory_space<vmem>>, vector<32x4xf32>,
    return
  }
  func.func @transform_0(%arg0: i32) -> (i32, i32) {
    %c0_i32 = arith.constant 0 : i32
    %c0_i32_0 = arith.constant 0 : i32
    return %arg0, %c0_i32 : i32, i32
  }
  func.func @transform_1(%arg0: i32) -> (i32, i32) {
    %c0_i32 = arith.constant 0 : i32
    %c0_i32_0 = arith.constant 0 : i32
    return %arg0, %c0_i32 : i32, i32
  }
}

</mosaic_0001>

<bundles_post_ra>
// kernel: tpu_custom_call.1
= control target key start
LH: loop header
LB: loop body
LE: loop exit
PB: predicated region body
PF: predicated region fallthrough
CT: control target
= control target key end

     0   :  { %6 = vsyncpa [#allocation3], 0  ;;  %s610_s0 = inlined_call_operand.hbm [shape: f32[64,256], index: 0, kind: input, shape index: {}]   ;;  %s611_s1 = inlined_call_operand.hbm [shape: f32[64,260], index: 1, kind: output, shape index: {}]  }
   0x1   :  { %8 = vsyncpa [#allocation3 + $0x1], 0 }
   0x2   :  { %9 = vsyncpa [#allocation4], 0 }
   0x3   :  { %11 = vsyncpa [#allocation4 + $0x1], 0  ;;  %s447_s6 = smov 0   ;;  %s449_s7 = smov 0  }
   0x4   :  { %s451_s8 = smov 0   ;;  %s453_s9 = smov 0  }
   0x5 LB: > { %s468_s10 = sadd.s32 4294967295, %s428_s9   ;;  %s263_s11 = sadd.s32 4294967294, %s428_s9   ;;  %s428_s9 = sphi %s453_s9, %s624_s9   ;;  %s424_s8 = sphi %s451_s8, %s623_s8   ;;  %s420_s7 = sphi %s449_s7, %s622_s7   ;;  %s416_s6 = sphi %s447_s6, %s621_s6  }
   0x6   : > { %s472_s12 = sadd.s32 1, %s428_s9   ;;  %s24_s13 = sadd.s32 1, %s424_s8 }
   0x7   : > { %s21_s14 = ssub.s32 %s428_s9, %s472_s12  ;;  %p31_p0 = scmp.ne.s32.totalorder %s424_s8, %s420_s7 }
   0x8   : > { %p22_p1 = scmp.eq.s32.totalorder %s21_s14, 0  ;;  %p32_p2 = scmp.eq.s32.totalorder %s428_s9, 0 }
   0x9   : > { %p37_p3 = scmp.ne.s32.totalorder %s420_s7, %s416_s6  ;;  %p38_p4 = scmp.eq.s32.totalorder %s468_s10, 0 }
   0xa   : > { %s484_s15 = scalar_select %p22_p1, %s424_s8, %s24_s13  }
   0xb   : > { %p486_p5 = por %p32_p2, %p31_p0  ;;  %p490_p6 = por %p38_p4, %p37_p3 }
   0xc   : > { %p61_p7 = scmp.eq.s32.totalorder %s468_s10, 1  ;;  %p67_p8 = scmp.eq.s32.totalorder %s263_s11, 1 }
   0xd   : > { %p293_p10 = scmp.lt.s32.totalorder %s428_s9, 2  ;;  %s87_s20 = sand.u32 1, %s424_s8  }
   0xe   : > { %p497_p11 = por %p61_p7, %p31_p0  ;;  %p501_p12 = por %p67_p8, %p37_p3 }
   0xf   : > { %s278_s21 = sshll.u32 %s428_s9, 10  ;;  %s266_s22 = sshll.u32 %s87_s20, 6 }
  0x10   : > { %s615_s18 = scalar_select %p497_p11, 1, 0 }
  0x11   : > { %s616_s19 = scalar_select %p501_p12, 1, 0 }
  0x12   : > { %s510_s25 = scalar_lea.hbm %s610_s0, %s278_s21  ;;  %s91_s26 = scalar_lea.vmem [#allocation2], %s266_s22 }
  0x13   : > { %s99_s27 = sshll.u32 %s91_s26, 4  ;;  %p514_p13 = pnand %p293_p10, %p486_p5  ;;  %s518_s27 = int_to_ptr.vmem [resolvable:$true] %s99_s27 }
  0x14   : > { %s520_s29 = scalar_lea.sflag [#allocation3], %s87_s20  ;;  %s332_s30 = scalar_lea.hbm %s510_s25, 1024 }
  0x15   : > { %p333_p0 = scmp.ne.s32.totalorder %s510_s25, %s332_s30  ;;  %p334_p1 = pneg %p514_p13 }
  0x16   : > { %s337_s4 = scalar_lea.hbm %s610_s0, 2048  ;;  %p338_p4 = scmp.lt.u32.totalorder %s510_s25, %s610_s0 }
  0x17   : > { %p335_p2 = pnand %p334_p1, %p333_p0  ;;  %p339_p5 = scmp.lt.u32.totalorder %s337_s4, %s332_s30 }
  0x18   : > { %p341_p8 = scmp.lt.u32.totalorder %s332_s30, %s510_s25 }
  0x19   : > { %p336_p3 = pneg %p335_p2  ;;  %p340_p7 = por %p339_p5, %p338_p4 }
  0x1b   : > { %p342_p10 = por %p341_p8, %p340_p7 }
  0x1d   : > { %p343_p9 = pnand %p342_p10, %p336_p3 }
  0x1f   : > { %346 = shalt.err (!%p343_p9)
}
  0x20   : > { %s347_s13 = scalar_lea.vmem %s518_s27, 1024  ;;  %s430_s14 = smov [#allocation2]  }
  0x21   : > { %p348_p0 = scmp.ne.s32.totalorder %s518_s27, %s347_s13  ;;  %s352_s16 = sshll.u32 %s430_s14, 4  ;;  %s353_s16 = int_to_ptr.vmem [resolvable:$false] %s352_s16 }
  0x22   : > { %s354_s20 = scalar_lea.vmem %s353_s16, 2048  ;;  %p355_p11 = scmp.lt.s32.totalorder %s518_s27, %s353_s16 }
  0x23   : > { %p350_p2 = pnand %p348_p0, %p334_p1  ;;  %p356_p4 = scmp.lt.s32.totalorder %s354_s20, %s347_s13 }
  0x25   : > { %p351_p12 = pneg %p350_p2  ;;  %p357_p5 = por %p356_p4, %p355_p11 }
  0x27   : > { %p358_p7 = pnand %p357_p5, %p351_p12 }
  0x29   : > { %361 = shalt.err (!%p358_p7)
}
  0x2a   : > { %s431_s21 = smov 256   ;;  %s432_s22 = smov 16  }
  0x2b   : > { %288 = dma.hbm_to_vmem [thread:$0]  (!%p514_p13), %s510_s25, 1024, %s518_s27, %s520_s29, %s431_s21, %s431_s21, %s432_s22  }
  0x2c   : > { %p270_p9 = scmp.ge.s32.totalorder %s428_s9, 1  ;;  %p107_p1 = scmp.lt.s32.totalorder %s428_s9, 3 }
  0x2e   : > { %p108_p3 = pnand %p270_p9, %p107_p1 }
  0x2f   : > { %s551_s23 = sand.u32 (!%p108_p3), 1, %s420_s7  }
  0x30   : > { %111 = sbr.rel (%p108_p3) target bundleno = 192 (0xc0), region = 24  ;;  %s271_s24 = sshll.u32 (!%p108_p3), %s551_s23, 6 }
  0x31   : > { %s114_s26 = scalar_lea.sflag (!%p108_p3), [#allocation3], %s551_s23  ;;  %s117_s30 = scalar_lea.vmem (!%p108_p3), [#allocation2], %s271_s24 }
  0x37   : > { %407 = dma.done.wait (%p490_p6), %s114_s26, 1024  }
  0x38   : > { %409 = vsyncadd (%p490_p6), %s114_s26, 4294966272  ;;  %s279_s25 = smul.u32 96, %s551_s23  ;;  %v143_v0 = vld [vmem:[%s117_s30 + $0x28] sm:$0xff]  ;;  %v145_v2 = vld [vmem:[%s117_s30 + $0x38] sm:$0xff]  ;;  %s433_s27 = smov 4   ;;  %vm170_vm0 = vcmask 31744  }
  0x39   : > { %v139_v1 = vld [vmem:[%s117_s30 + $0x8] sm:$0xff]  ;;  %162 = vrot.lane.b32.xlu1 %v143_v0, %s433_s27  ;;  %v141_v3 = vld [vmem:[%s117_s30 + $0x18] sm:$0xff]  ;;  %v138_v4 = vld [vmem:[%s117_s30] sm:$0xff]  ;;  %s280_s17 = smul.u32 1536, %s468_s10  ;;  %s176_s10 = scalar_lea.sflag [#allocation4], %s551_s23 }
  0x3a   : > { %s135_s28 = scalar_lea.vmem [#allocation5], %s279_s25  ;;  %158 = vrot.lane.b32.xlu0 %v139_v1, %s433_s27  ;;  %v140_v5 = vld [vmem:[%s117_s30 + $0x10] sm:$0xff]  ;;  %v142_v6 = vld [vmem:[%s117_s30 + $0x20] sm:$0xff]  ;;  %p618_p11 = scmp.ne.s32.totalorder %s615_s18, 0 }
  0x3b   : > { %151 = vst [vmem:[%s135_s28 + $0x38] sm:$0xff] %v143_v0  ;;  %147 = vst [vmem:[%s135_s28 + $0x8] sm:$0xff] %v139_v1  ;;  %v144_v7 = vld [vmem:[%s117_s30 + $0x30] sm:$0xff]  ;;  %s190_s29 = sshll.u32 %s135_s28, 4  ;;  %s564_s4 = scalar_lea.hbm %s611_s1, %s280_s17  ;;  %s566_s29 = int_to_ptr.vmem [resolvable:$true] %s190_s29 }
  0x3c   : > { %153 = vst [vmem:[%s135_s28 + $0x50] sm:$0xff] %v145_v2  ;;  %149 = vst [vmem:[%s135_s28 + $0x20] sm:$0xff] %v141_v3  ;;  %s362_s5 = scalar_lea.vmem %s566_s29, 1536  ;;  %s434_s11 = smov [#allocation5]  }
  0x3d   : > { %146 = vst [vmem:[%s135_s28] sm:$0xff] %v138_v4  ;;  %148 = vst [vmem:[%s135_s28 + $0x18] sm:$0xff] %v140_v5  ;;  %164 = vrot.lane.b32.xlu1 %v145_v2, %s433_s27  ;;  %p363_p6 = scmp.ne.s32.totalorder %s566_s29, %s362_s5  ;;  %s366_s13 = sshll.u32 %s434_s11, 4  ;;  %s367_s13 = int_to_ptr.vmem [resolvable:$false] %s366_s13 }
  0x3e   : > { %150 = vst [vmem:[%s135_s28 + $0x30] sm:$0xff] %v142_v6  ;;  %152 = vst [vmem:[%s135_s28 + $0x48] sm:$0xff] %v144_v7  ;;  %160 = vrot.lane.b32.xlu0 %v141_v3, %s433_s27  ;;  %s368_s14 = scalar_lea.vmem %s367_s13, 3072  ;;  %p369_p8 = scmp.lt.s32.totalorder %s566_s29, %s367_s13 }
  0x3f   : > { %p364_p12 = pnand %p363_p6, %p618_p11  ;;  %p370_p10 = scmp.lt.s32.totalorder %s368_s14, %s362_s5 }
  0x41   : > { %p365_p13 = pneg %p364_p12  ;;  %p371_p0 = por %p370_p10, %p369_p8 }
  0x43   : > { %p372_p2 = pnand %p371_p0, %p365_p13 }
  0xab   : > { %v163_v8 = vpop.permute.xlu1 %162 }
  0xac   : > { %v159_v9 = vpop.permute.xlu0 %158  ;;  %173 = vst.msk [vmem:[%s135_s28 + $0x40] sm:$0xff] %vm170_vm0, %v163_v8 }
  0xad   : > { %171 = vst.msk [vmem:[%s135_s28 + $0x10] sm:$0xff] %vm170_vm0, %v159_v9 }
  0xaf   : > { %v165_v10 = vpop.permute.xlu1 %164 }
  0xb0   : > { %v161_v11 = vpop.permute.xlu0 %160  ;;  %174 = vst.msk [vmem:[%s135_s28 + $0x58] sm:$0xff] %vm170_vm0, %v165_v10 }
  0xb1   : > { %172 = vst.msk [vmem:[%s135_s28 + $0x28] sm:$0xff] %vm170_vm0, %v161_v11 }
  0xb2   : > { %375 = shalt.err (!%p372_p2)
}
  0xb3   : > { %s376_s16 = scalar_lea.hbm %s564_s4, 1536  ;;  %s380_s22 = scalar_lea.hbm %s611_s1, 3072 }
  0xb4   : > { %p377_p4 = scmp.ne.s32.totalorder %s564_s4, %s376_s16  ;;  %p381_p9 = scmp.lt.u32.totalorder %s564_s4, %s611_s1 }
  0xb5   : > { %p382_p1 = scmp.lt.u32.totalorder %s380_s22, %s376_s16  ;;  %p384_p6 = scmp.lt.u32.totalorder %s376_s16, %s564_s4 }
  0xb6   : > { %p378_p5 = pnand %p377_p4, %p618_p11 }
  0xb7   : > { %p383_p3 = por %p382_p1, %p381_p9 }
  0xb8   : > { %p379_p7 = pneg %p378_p5 }
  0xb9   : > { %p385_p12 = por %p384_p6, %p383_p3 }
  0xbb   : > { %p386_p13 = pnand %p385_p12, %p379_p7 }
  0xbd   : > { %389 = shalt.err (!%p386_p13)
}
  0xbe   : > { %s435_s30 = smov 384   ;;  %s436_s25 = smov 24  }
  0xbf   : > { %283 = dma.vmem_to_hbm [thread:$0]  (%p618_p11), %s566_s29, 1536, %s564_s4, %s176_s10, %s435_s30, %s435_s30, %s436_s25  }
  0xc0 PF: > { %s205_s27 = sand.u32 1, %s416_s6   ;;  %p619_p8 = scmp.ne.s32.totalorder %s616_s19, 0 }
  0xc1   : > { %p620_p10 = scmp.ge.s32.totalorder %s428_s9, 2  ;;  %s206_s28 = scalar_lea.sflag [#allocation4], %s205_s27 }
  0xc3   : > { %p290_p0 = pnand %p620_p10, %p619_p8 }
  0xc5   : > { %411 = dma.done.wait (!%p290_p0), %s206_s28, 1536  }
  0xc6   : > { %413 = vsyncadd (!%p290_p0), %s206_s28, 4294965760  ;;  %p14_p2 = scmp.ge.s32.totalorder %s472_s12, 4   ;;  %s621_s6 = smov %s420_s7 }
  0xc7   : > { %s622_s7 = smov %s424_s8  ;;  %s623_s8 = smov %s484_s15 }
  0xc8   : > { %s624_s9 = smov %s472_s12  ;;  %16 = sbr.rel (!%p14_p2) target bundleno = 5 (0x5), region = 69 }
  0xcf   :  { %211 = vsyncpa [#allocation3], 1 }
  0xd0   :  { %213 = vsyncpa [#allocation3 + $0x1], 1 }
  0xd1   :  { %214 = vsyncpa [#allocation4], 1 }
  0xd2   :  { %216 = vsyncpa [#allocation4 + $0x1], 1 }

</bundles_post_ra>
